<compile_context>
chip_gen: v7x
topology: tpu7x:2x2x1
jax: 0.10.0
libtpu: 0.0.40
codegen_flags: <defaults>
</compile_context>

<pallas_src>
import functools

import jax
import jax.numpy as jnp
from jax.experimental import pallas as pl
from jax.experimental.pallas import tpu as pltpu

NEG_SLOPE = 0.01            # nn.LeakyReLU() default negative_slope
LANE = 128                  # TPU lane width
BF16_SUBLANE = 16           # bf16 rows per packed vreg sublane group
DEFAULT_TM = 1024           # batch-tile rows (amortizes ~0.35us/step grid overhead)
VMEM_LIMIT = 32 * 1024 * 1024


def _round_up(x: int, m: int) -> int:
    return ((x + m - 1) // m) * m


def _default_epilogue_dtype():
    """bf16 epilogue on chips with bf16 VPUs (v6e / v7x); f32 otherwise."""
    try:
        kind = jax.devices()[0].device_kind.lower()
    except Exception:
        return jnp.float32
    if ("v6" in kind) or ("v7" in kind) or ("7x" in kind):
        return jnp.bfloat16
    return jnp.float32


def _mlp_kernel(numlayers, epilogue_dtype, x_ref, *refs):
    """refs = (w0, b0, w1, b1, ..., w_{L-1}, b_{L-1}, o_ref).

    x_ref : (TM, inchans)  bf16 batch tile.
    w_i   : (in_i, out_i)  bf16, whole array resident in VMEM.
    b_i   : (1, out_i)     epilogue_dtype, whole array resident in VMEM.
    o_ref : (TM, out_pad)  bf16 lane-dense output tile.
    """
    o_ref = refs[-1]
    wb = refs[:-1]

    h = x_ref[...]                                     # bf16 on the MXU input path
    for i in range(numlayers):
        w = wb[2 * i][...]                             # bf16 (in, out)
        b = wb[2 * i + 1][...]                         # (1, out), epilogue dtype
        acc = jnp.dot(h, w, preferred_element_type=jnp.float32)
        acc = acc.astype(epilogue_dtype) + b           # bias add in epilogue dtype
        if i < numlayers - 1:                          # last linear has no activation
            acc = jnp.maximum(acc, acc * NEG_SLOPE)    # LeakyReLU, single VALU max
            h = acc.astype(jnp.bfloat16)               # bf16 for the next MXU issue
        else:
            h = acc
    o_ref[...] = h.astype(o_ref.dtype)


def init_mlp_params(key, inchans, outchans, chans=128, numlayers=8,
                    dtype=jnp.float32):
    """Deterministic init mimicking nn.Linear: U(-1/sqrt(fan_in), 1/sqrt(fan_in)).

    Weights stored as (in_features, out_features) — transpose of nn.Linear —
    so each layer is `h @ W + b` on the MXU.
    """
    dims = [inchans] + [chans] * (numlayers - 1) + [outchans]
    params = []
    for i in range(numlayers):
        fan_in, fan_out = dims[i], dims[i + 1]
        key, kw, kb = jax.random.split(key, 3)
        bound = 1.0 / (fan_in ** 0.5)
        w = jax.random.uniform(kw, (fan_in, fan_out), dtype, -bound, bound)
        b = jax.random.uniform(kb, (1, fan_out), dtype, -bound, bound)
        params.append((w, b))
    return params


def _choose_tm(tm_req, b_pad, inchans, widths, out_pad, weight_bytes):
    """Pick the batch tile: <= requested, multiple of 16, >=2 grid steps when
    possible (v7x megacore), and fitting the scoped-VMEM budget."""
    tm = max(BF16_SUBLANE, _round_up(min(tm_req, b_pad), BF16_SUBLANE))
    # Keep at least 2 grid steps when the batch is big enough (2 TensorCores).
    if b_pad >= 2 * BF16_SUBLANE:
        tm = min(tm, _round_up(pl.cdiv(b_pad, 2), BF16_SUBLANE))

    budget = VMEM_LIMIT - weight_bytes - (4 << 20)     # headroom for compiler scratch
    max_w = max([inchans, out_pad] + list(widths))

    def tile_bytes(t):
        return (2 * t * inchans * 2        # double-buffered bf16 x tile
                + 2 * t * out_pad * 2      # double-buffered bf16 out tile
                + 2 * t * max_w * 4)       # f32 working activations (~2 live)

    while tm > BF16_SUBLANE and tile_bytes(tm) > budget:
        tm = max(BF16_SUBLANE, _round_up(tm // 2, BF16_SUBLANE))
    return tm


def mlp_forward(x, params, batch_dim=True, tm=DEFAULT_TM, epilogue_dtype=None):
    """Pallas equivalent of MLP.forward(x, batch_dim)."""
    if epilogue_dtype is None:
        epilogue_dtype = _default_epilogue_dtype()

    if batch_dim:
        x2 = x.reshape(x.shape[0], -1)       # torch.flatten(x, start_dim=1)
    else:
        x2 = x.reshape(1, -1)                # torch.flatten(x, start_dim=0), batch=1

    numlayers = len(params)
    batch, inchans = x2.shape
    outchans = params[-1][0].shape[1]
    out_pad = _round_up(outchans, LANE)      # lane-dense output width

    # --- prepare operands -----------------------------------------------------
    x_bf = x2.astype(jnp.bfloat16)
    ws = [w.astype(jnp.bfloat16) for (w, _) in params]
    bs = [b.astype(epilogue_dtype) for (_, b) in params]
    if out_pad != outchans:                  # zero-pad last layer's output columns
        ws[-1] = jnp.pad(ws[-1], ((0, 0), (0, out_pad - outchans)))
        bs[-1] = jnp.pad(bs[-1], ((0, 0), (0, out_pad - outchans)))

    # --- batch tiling -----------------------------------------------------------
    b_pad = _round_up(batch, BF16_SUBLANE)   # bf16 sublane packing only
    if b_pad != batch:
        x_bf = jnp.pad(x_bf, ((0, b_pad - batch), (0, 0)))

    weight_bytes = sum(int(w.size) * 2 for w in ws) + \
        sum(int(b.size) * jnp.dtype(epilogue_dtype).itemsize for b in bs)
    widths = [int(w.shape[1]) for w in ws]
    tm_eff = _choose_tm(tm, b_pad, inchans, widths, out_pad, weight_bytes)
    grid = (pl.cdiv(b_pad, tm_eff),)         # ragged last tile handled by Pallas

    flat_inputs = [x_bf]
    for w, b in zip(ws, bs):
        flat_inputs.extend([w, b])

    resident_vmem = pl.BlockSpec(memory_space=pltpu.MemorySpace.VMEM)
    in_specs = [pl.BlockSpec((tm_eff, inchans), lambda i: (i, 0))]
    in_specs += [resident_vmem] * (2 * numlayers)
    out_specs = pl.BlockSpec((tm_eff, out_pad), lambda i: (i, 0))

    # Advisory cost estimate for the XLA scheduler.
    rows_total = grid[0] * tm_eff
    flops = 2 * rows_total * sum(int(w.shape[0]) * int(w.shape[1]) for w in ws)
    bytes_accessed = (int(x_bf.size) * 2 + weight_bytes + rows_total * out_pad * 2)
    cost = pl.CostEstimate(flops=flops, transcendentals=0,
                           bytes_accessed=bytes_accessed)

    out = pl.pallas_call(
        functools.partial(_mlp_kernel, numlayers, epilogue_dtype),
        out_shape=jax.ShapeDtypeStruct((b_pad, out_pad), jnp.bfloat16),
        grid=grid,
        in_specs=in_specs,
        out_specs=out_specs,
        compiler_params=pltpu.CompilerParams(
            dimension_semantics=("parallel",),     # megacore-shard the batch axis
            vmem_limit_bytes=VMEM_LIMIT,           # fits v5e/v6e/v7x scoped VMEM
        ),
        cost_estimate=cost,
    )(*flat_inputs)

    out = out[:batch, :outchans].astype(x2.dtype)  # strip batch + lane padding
    if not batch_dim:
        out = out.reshape(outchans)
    return out


def _mlp_reference(x, params, batch_dim=True, epilogue_dtype=jnp.float32):
    """Pure-JAX mirror of the kernel's numerical recipe (bf16 matmul operands,
    configurable epilogue dtype, bf16 output store)."""
    h = x.reshape(x.shape[0], -1) if batch_dim else x.reshape(1, -1)
    h = h.astype(jnp.bfloat16)
    numlayers = len(params)
    for i, (w, b) in enumerate(params):
        acc = jnp.dot(h, w.astype(jnp.bfloat16), preferred_element_type=jnp.float32)
        acc = acc.astype(epilogue_dtype) + b.astype(epilogue_dtype)
        if i < numlayers - 1:
            acc = jnp.maximum(acc, acc * NEG_SLOPE)
            h = acc.astype(jnp.bfloat16)
        else:
            h = acc
    out = h.astype(jnp.bfloat16).astype(jnp.float32)
    return out if batch_dim else out.reshape(-1)


def _mlp_reference_f32(x, params, batch_dim=True):
    """Full-precision reference of the original PyTorch module (sanity check)."""
    h = x.reshape(x.shape[0], -1) if batch_dim else x.reshape(1, -1)
    h = h.astype(jnp.float32)
    numlayers = len(params)
    for i, (w, b) in enumerate(params):
        h = h @ w + b
        if i < numlayers - 1:
            h = jnp.maximum(h, NEG_SLOPE * h)
    return h if batch_dim else h.reshape(-1)


if __name__ == "__main__":
    key = jax.random.PRNGKey(0)
    kx, kp = jax.random.split(key)

    # Small shapes: x of shape (2, 4, 4, 4) -> flattened inchans = 64.
    batch, inchans, outchans, chans, numlayers = 2, 4 * 4 * 4, 32, 128, 8
    x = jax.random.normal(kx, (batch, 4, 4, 4), jnp.float32)
    params = init_mlp_params(kp, inchans, outchans, chans, numlayers)

    epi = _default_epilogue_dtype()

    y = mlp_forward(x, params, batch_dim=True, epilogue_dtype=epi)
    jax.block_until_ready(y)
    assert y.shape == (batch, outchans), y.shape

    y_ref = _mlp_reference(x, params, batch_dim=True, epilogue_dtype=epi)
    assert jnp.allclose(y, y_ref, rtol=2e-2, atol=2e-2), "mismatch vs bf16-recipe reference"

    y_f32 = _mlp_reference_f32(x, params, batch_dim=True)
    assert jnp.allclose(y, y_f32, rtol=1e-1, atol=1e-1), "mismatch vs f32 reference"

    # Also exercise the no-batch-dim path (torch.flatten(x, start_dim=0)).
    y1 = mlp_forward(x[0], params, batch_dim=False, epilogue_dtype=epi)
    jax.block_until_ready(y1)
    assert y1.shape == (outchans,), y1.shape
    y1_ref = _mlp_reference(x[0], params, batch_dim=False, epilogue_dtype=epi)
    assert jnp.allclose(y1, y1_ref, rtol=2e-2, atol=2e-2), "mismatch (batch_dim=False)"

    print("KERNEL_OK")
</pallas_src>

<mosaic_0001>
module attributes {stable_mosaic.version = 11 : i64} {
  func.func @_mlp_kernel(%arg0: i32, %arg1: memref<16x64xbf16, #tpu.memory_space<vmem>>, %arg2: memref<64x128xbf16, #tpu.memory_space<vmem>>, %arg3: memref<1x128xf32, #tpu.memory_space<vmem>>, %arg4: memref<128x128xbf16, #tpu.memory_space<vmem>>, %arg5: memref<1x128xf32, #tpu.memory_space<vmem>>, %arg6: memref<128x128xbf16, #tpu.memory_space<vmem>>, %arg7: memref<1x128xf32, #tpu.memory_space<vmem>>, %arg8: memref<128x128xbf16, #tpu.memory_space<vmem>>, %arg9: memref<1x128xf32, #tpu.memory_space<vmem>>, %arg10: memref<128x128xbf16, #tpu.memory_space<vmem>>, %arg11: memref<1x128xf32, #tpu.memory_space<vmem>>, %arg12: memref<128x128xbf16, #tpu.memory_space<vmem>>, %arg13: memref<1x128xf32, #tpu.memory_space<vmem>>, %arg14: memref<128x128xbf16, #tpu.memory_space<vmem>>, %arg15: memref<1x128xf32, #tpu.memory_space<vmem>>, %arg16: memref<128x128xbf16, #tpu.memory_space<vmem>>, %arg17: memref<1x128xf32, #tpu.memory_space<vmem>>, %arg18: memref<16x128xbf16, #tpu.memory_space<vmem>>) attributes {dimension_semantics = [#tpu.dimension_semantics<parallel>], iteration_bounds = array<i64: 1>, scalar_prefetch = 0 : i64, scratch_operands = 0 : i64, tpu.core_type = #tpu.core_type<tc>, window_params = [{transform_indices = @transform_0, window_bounds = array<i64: 16, 64>}, {pipeline_mode = #tpu.pipeline_mode<synchronous>, transform_indices = @transform_1, window_bounds = array<i64: 64, 128>}, {pipeline_mode = #tpu.pipeline_mode<synchronous>, transform_indices = @transform_2, window_bounds = array<i64: 1, 128>}, {pipeline_mode = #tpu.pipeline_mode<synchronous>, transform_indices = @transform_3, window_bounds = array<i64: 128, 128>}, {pipeline_mode = #tpu.pipeline_mode<synchronous>, transform_indices = @transform_4, window_bounds = array<i64: 1, 128>}, {pipeline_mode = #tpu.pipeline_mode<synchronous>, transform_indices = @transform_5, window_bounds = array<i64: 128, 128>}, {pipeline_mode = #tpu.pipeline_mode<synchronous>, transform_indices = @transform_6, window_bounds = array<i64: 1, 128>}, {pipeline_mode = #tpu.pipeline_mode<synchronous>, transform_indices = @transform_7, window_bounds = array<i64: 128, 128>}, {pipeline_mode = #tpu.pipeline_mode<synchronous>, transform_indices = @transform_8, window_bounds = array<i64: 1, 128>}, {pipeline_mode = #tpu.pipeline_mode<synchronous>, transform_indices = @transform_9, window_bounds = array<i64: 128, 128>}, {pipeline_mode = #tpu.pipeline_mode<synchronous>, transform_indices = @transform_10, window_bounds = array<i64: 1, 128>}, {pipeline_mode = #tpu.pipeline_mode<synchronous>, transform_indices = @transform_11, window_bounds = array<i64: 128, 128>}, {pipeline_mode = #tpu.pipeline_mode<synchronous>, transform_indices = @transform_12, window_bounds = array<i64: 1, 128>}, {pipeline_mode = #tpu.pipeline_mode<synchronous>, transform_indices = @transform_13, window_bounds = array<i64: 128, 128>}, {pipeline_mode = #tpu.pipeline_mode<synchronous>, transform_indices = @transform_14, window_bounds = array<i64: 1, 128>}, {pipeline_mode = #tpu.pipeline_mode<synchronous>, transform_indices = @transform_15, window_bounds = array<i64: 128, 128>}, {pipeline_mode = #tpu.pipeline_mode<synchronous>, transform_indices = @transform_16, window_bounds = array<i64: 1, 128>}, {transform_indices = @transform_17, window_bounds = array<i64: 16, 128>}]} {
    %c0 = arith.constant 0 : index
    %c0_0 = arith.constant 0 : index
    %0 = vector.load %arg1[%c0, %c0_0] : memref<16x64xbf16, #tpu.memory_space<vmem>>, vector<16x64xbf16>
    %c0_1 = arith.constant 0 : index
    %c0_2 = arith.constant 0 : index
    %1 = vector.load %arg2[%c0_1, %c0_2] : memref<64x128xbf16, #tpu.memory_space<vmem>>, vector<64x128xbf16>
    %c0_3 = arith.constant 0 : index
    %c0_4 = arith.constant 0 : index
    %2 = vector.load %arg3[%c0_3, %c0_4] : memref<1x128xf32, #tpu.memory_space<vmem>>, vector<1x128xf32>
    %cst = arith.constant dense<0.000000e+00> : vector<16x128xf32>
    %3 = tpu.matmul %0, %1, %cst {dimension_numbers = #tpu.dot_dimension_numbers<[1], [0], [0], [1], [0, 0, 1, 1], [], []>} : vector<16x64xbf16>, vector<64x128xbf16>, vector<16x128xf32> -> vector<16x128xf32>
    %4 = vector.broadcast %2 : vector<1x128xf32> to vector<16x128xf32>
    %5 = arith.addf %3, %4 : vector<16x128xf32>
    %cst_5 = arith.constant 0.00999999977 : f32
    %6 = vector.broadcast %cst_5 : f32 to vector<16x128xf32>
    %7 = arith.mulf %5, %6 : vector<16x128xf32>
    %8 = arith.maximumf %5, %7 : vector<16x128xf32>
    %9 = arith.truncf %8 : vector<16x128xf32> to vector<16x128xbf16>
    %c0_6 = arith.constant 0 : index
    %c0_7 = arith.constant 0 : index
    %10 = vector.load %arg4[%c0_6, %c0_7] : memref<128x128xbf16, #tpu.memory_space<vmem>>, vector<128x128xbf16>
    %c0_8 = arith.constant 0 : index
    %c0_9 = arith.constant 0 : index
    %11 = vector.load %arg5[%c0_8, %c0_9] : memref<1x128xf32, #tpu.memory_space<vmem>>, vector<1x128xf32>
    %cst_10 = arith.constant dense<0.000000e+00> : vector<16x128xf32>
    %12 = tpu.matmul %9, %10, %cst_10 {dimension_numbers = #tpu.dot_dimension_numbers<[1], [0], [0], [1], [0, 0, 1, 1], [], []>} : vector<16x128xbf16>, vector<128x128xbf16>, vector<16x128xf32> -> vector<16x128xf32>
    %13 = vector.broadcast %11 : vector<1x128xf32> to vector<16x128xf32>
    %14 = arith.addf %12, %13 : vector<16x128xf32>
    %cst_11 = arith.constant 0.00999999977 : f32
    %15 = vector.broadcast %cst_11 : f32 to vector<16x128xf32>
    %16 = arith.mulf %14, %15 : vector<16x128xf32>
    %17 = arith.maximumf %14, %16 : vector<16x128xf32>
    %18 = arith.truncf %17 : vector<16x128xf32> to vector<16x128xbf16>
    %c0_12 = arith.constant 0 : index
    %c0_13 = arith.constant 0 : index
    %19 = vector.load %arg6[%c0_12, %c0_13] : memref<128x128xbf16, #tpu.memory_space<vmem>>, vector<128x128xbf16>
    %c0_14 = arith.constant 0 : index
    %c0_15 = arith.constant 0 : index
    %20 = vector.load %arg7[%c0_14, %c0_15] : memref<1x128xf32, #tpu.memory_space<vmem>>, vector<1x128xf32>
    %cst_16 = arith.constant dense<0.000000e+00> : vector<16x128xf32>
    %21 = tpu.matmul %18, %19, %cst_16 {dimension_numbers = #tpu.dot_dimension_numbers<[1], [0], [0], [1], [0, 0, 1, 1], [], []>} : vector<16x128xbf16>, vector<128x128xbf16>, vector<16x128xf32> -> vector<16x128xf32>
    %22 = vector.broadcast %20 : vector<1x128xf32> to vector<16x128xf32>
    %23 = arith.addf %21, %22 : vector<16x128xf32>
    %cst_17 = arith.constant 0.00999999977 : f32
    %24 = vector.broadcast %cst_17 : f32 to vector<16x128xf32>
    %25 = arith.mulf %23, %24 : vector<16x128xf32>
    %26 = arith.maximumf %23, %25 : vector<16x128xf32>
    %27 = arith.truncf %26 : vector<16x128xf32> to vector<16x128xbf16>
    %c0_18 = arith.constant 0 : index
    %c0_19 = arith.constant 0 : index
    %28 = vector.load %arg8[%c0_18, %c0_19] : memref<128x128xbf16, #tpu.memory_space<vmem>>, vector<128x128xbf16>
    %c0_20 = arith.constant 0 : index
    %c0_21 = arith.constant 0 : index
    %29 = vector.load %arg9[%c0_20, %c0_21] : memref<1x128xf32, #tpu.memory_space<vmem>>, vector<1x128xf32>
    %cst_22 = arith.constant dense<0.000000e+00> : vector<16x128xf32>
    %30 = tpu.matmul %27, %28, %cst_22 {dimension_numbers = #tpu.dot_dimension_numbers<[1], [0], [0], [1], [0, 0, 1, 1], [], []>} : vector<16x128xbf16>, vector<128x128xbf16>, vector<16x128xf32> -> vector<16x128xf32>
    %31 = vector.broadcast %29 : vector<1x128xf32> to vector<16x128xf32>
    %32 = arith.addf %30, %31 : vector<16x128xf32>
    %cst_23 = arith.constant 0.00999999977 : f32
    %33 = vector.broadcast %cst_23 : f32 to vector<16x128xf32>
    %34 = arith.mulf %32, %33 : vector<16x128xf32>
    %35 = arith.maximumf %32, %34 : vector<16x128xf32>
    %36 = arith.truncf %35 : vector<16x128xf32> to vector<16x128xbf16>
    %c0_24 = arith.constant 0 : index
    %c0_25 = arith.constant 0 : index
    %37 = vector.load %arg10[%c0_24, %c0_25] : memref<128x128xbf16, #tpu.memory_space<vmem>>, vector<128x128xbf16>
    %c0_26 = arith.constant 0 : index
    %c0_27 = arith.constant 0 : index
    %38 = vector.load %arg11[%c0_26, %c0_27] : memref<1x128xf32, #tpu.memory_space<vmem>>, vector<1x128xf32>
    %cst_28 = arith.constant dense<0.000000e+00> : vector<16x128xf32>
    %39 = tpu.matmul %36, %37, %cst_28 {dimension_numbers = #tpu.dot_dimension_numbers<[1], [0], [0], [1], [0, 0, 1, 1], [], []>} : vector<16x128xbf16>, vector<128x128xbf16>, vector<16x128xf32> -> vector<16x128xf32>
    %40 = vector.broadcast %38 : vector<1x128xf32> to vector<16x128xf32>
    %41 = arith.addf %39, %40 : vector<16x128xf32>
    %cst_29 = arith.constant 0.00999999977 : f32
    %42 = vector.broadcast %cst_29 : f32 to vector<16x128xf32>
    %43 = arith.mulf %41, %42 : vector<16x128xf32>
    %44 = arith.maximumf %41, %43 : vector<16x128xf32>
    %45 = arith.truncf %44 : vector<16x128xf32> to vector<16x128xbf16>
    %c0_30 = arith.constant 0 : index
    %c0_31 = arith.constant 0 : index
    %46 = vector.load %arg12[%c0_30, %c0_31] : memref<128x128xbf16, #tpu.memory_space<vmem>>, vector<128x128xbf16>
    %c0_32 = arith.constant 0 : index
    %c0_33 = arith.constant 0 : index
    %47 = vector.load %arg13[%c0_32, %c0_33] : memref<1x128xf32, #tpu.memory_space<vmem>>, vector<1x128xf32>
    %cst_34 = arith.constant dense<0.000000e+00> : vector<16x128xf32>
    %48 = tpu.matmul %45, %46, %cst_34 {dimension_numbers = #tpu.dot_dimension_numbers<[1], [0], [0], [1], [0, 0, 1, 1], [], []>} : vector<16x128xbf16>, vector<128x128xbf16>, vector<16x128xf32> -> vector<16x128xf32>
    %49 = vector.broadcast %47 : vector<1x128xf32> to vector<16x128xf32>
    %50 = arith.addf %48, %49 : vector<16x128xf32>
    %cst_35 = arith.constant 0.00999999977 : f32
    %51 = vector.broadcast %cst_35 : f32 to vector<16x128xf32>
    %52 = arith.mulf %50, %51 : vector<16x128xf32>
    %53 = arith.maximumf %50, %52 : vector<16x128xf32>
    %54 = arith.truncf %53 : vector<16x128xf32> to vector<16x128xbf16>
    %c0_36 = arith.constant 0 : index
    %c0_37 = arith.constant 0 : index
    %55 = vector.load %arg14[%c0_36, %c0_37] : memref<128x128xbf16, #tpu.memory_space<vmem>>, vector<128x128xbf16>
    %c0_38 = arith.constant 0 : index
    %c0_39 = arith.constant 0 : index
    %56 = vector.load %arg15[%c0_38, %c0_39] : memref<1x128xf32, #tpu.memory_space<vmem>>, vector<1x128xf32>
    %cst_40 = arith.constant dense<0.000000e+00> : vector<16x128xf32>
    %57 = tpu.matmul %54, %55, %cst_40 {dimension_numbers = #tpu.dot_dimension_numbers<[1], [0], [0], [1], [0, 0, 1, 1], [], []>} : vector<16x128xbf16>, vector<128x128xbf16>, vector<16x128xf32> -> vector<16x128xf32>
    %58 = vector.broadcast %56 : vector<1x128xf32> to vector<16x128xf32>
    %59 = arith.addf %57, %58 : vector<16x128xf32>
    %cst_41 = arith.constant 0.00999999977 : f32
    %60 = vector.broadcast %cst_41 : f32 to vector<16x128xf32>
    %61 = arith.mulf %59, %60 : vector<16x128xf32>
    %62 = arith.maximumf %59, %61 : vector<16x128xf32>
    %63 = arith.truncf %62 : vector<16x128xf32> to vector<16x128xbf16>
    %c0_42 = arith.constant 0 : index
    %c0_43 = arith.constant 0 : index
    %64 = vector.load %arg16[%c0_42, %c0_43] : memref<128x128xbf16, #tpu.memory_space<vmem>>, vector<128x128xbf16>
    %c0_44 = arith.constant 0 : index
    %c0_45 = arith.constant 0 : index
    %65 = vector.load %arg17[%c0_44, %c0_45] : memref<1x128xf32, #tpu.memory_space<vmem>>, vector<1x128xf32>
    %cst_46 = arith.constant dense<0.000000e+00> : vector<16x128xf32>
    %66 = tpu.matmul %63, %64, %cst_46 {dimension_numbers = #tpu.dot_dimension_numbers<[1], [0], [0], [1], [0, 0, 1, 1], [], []>} : vector<16x128xbf16>, vector<128x128xbf16>, vector<16x128xf32> -> vector<16x128xf32>
    %67 = vector.broadcast %65 : vector<1x128xf32> to vector<16x128xf32>
    %68 = arith.addf %66, %67 : vector<16x128xf32>
    %69 = arith.truncf %68 : vector<16x128xf32> to vector<16x128xbf16>
    %c0_47 = arith.constant 0 : index
    %c0_48 = arith.constant 0 : index
    %70 = vector.load %arg18[%c0_47, %c0_48] : memref<16x128xbf16, #tpu.memory_space<vmem>>, vector<16x128xbf16>
    tpu.vector_store %arg18[%c0_47, %c0_48], %69 {strides = array<i32>} : memref<16x128xbf16, #tpu.memory_space<vmem>>, vector<16x128xbf16>,
    return
  }
  func.func @transform_0(%arg0: i32) -> (i32, i32) {
    %c0_i32 = arith.constant 0 : i32
    %c0_i32_0 = arith.constant 0 : i32
    return %arg0, %c0_i32 : i32, i32
  }
  func.func @transform_1(%arg0: i32) -> (i32, i32) {
    %c0_i32 = arith.constant 0 : i32
    %c0_i32_0 = arith.constant 0 : i32
    %c0_i32_1 = arith.constant 0 : i32
    return %c0_i32, %c0_i32_0 : i32, i32
  }
  func.func @transform_2(%arg0: i32) -> (i32, i32) {
    %c0_i32 = arith.constant 0 : i32
    %c0_i32_0 = arith.constant 0 : i32
    %c0_i32_1 = arith.constant 0 : i32
    return %c0_i32, %c0_i32_0 : i32, i32
  }
  func.func @transform_3(%arg0: i32) -> (i32, i32) {
    %c0_i32 = arith.constant 0 : i32
    %c0_i32_0 = arith.constant 0 : i32
    %c0_i32_1 = arith.constant 0 : i32
    return %c0_i32, %c0_i32_0 : i32, i32
  }
  func.func @transform_4(%arg0: i32) -> (i32, i32) {
    %c0_i32 = arith.constant 0 : i32
    %c0_i32_0 = arith.constant 0 : i32
    %c0_i32_1 = arith.constant 0 : i32
    return %c0_i32, %c0_i32_0 : i32, i32
  }
  func.func @transform_5(%arg0: i32) -> (i32, i32) {
    %c0_i32 = arith.constant 0 : i32
    %c0_i32_0 = arith.constant 0 : i32
    %c0_i32_1 = arith.constant 0 : i32
    return %c0_i32, %c0_i32_0 : i32, i32
  }
  func.func @transform_6(%arg0: i32) -> (i32, i32) {
    %c0_i32 = arith.constant 0 : i32
    %c0_i32_0 = arith.constant 0 : i32
    %c0_i32_1 = arith.constant 0 : i32
    return %c0_i32, %c0_i32_0 : i32, i32
  }
  func.func @transform_7(%arg0: i32) -> (i32, i32) {
    %c0_i32 = arith.constant 0 : i32
    %c0_i32_0 = arith.constant 0 : i32
    %c0_i32_1 = arith.constant 0 : i32
    return %c0_i32, %c0_i32_0 : i32, i32
  }
  func.func @transform_8(%arg0: i32) -> (i32, i32) {
    %c0_i32 = arith.constant 0 : i32
    %c0_i32_0 = arith.constant 0 : i32
    %c0_i32_1 = arith.constant 0 : i32
    return %c0_i32, %c0_i32_0 : i32, i32
  }
  func.func @transform_9(%arg0: i32) -> (i32, i32) {
    %c0_i32 = arith.constant 0 : i32
    %c0_i32_0 = arith.constant 0 : i32
    %c0_i32_1 = arith.constant 0 : i32
    return %c0_i32, %c0_i32_0 : i32, i32
  }
  func.func @transform_10(%arg0: i32) -> (i32, i32) {
    %c0_i32 = arith.constant 0 : i32
    %c0_i32_0 = arith.constant 0 : i32
    %c0_i32_1 = arith.constant 0 : i32
    return %c0_i32, %c0_i32_0 : i32, i32
  }
  func.func @transform_11(%arg0: i32) -> (i32, i32) {
    %c0_i32 = arith.constant 0 : i32
    %c0_i32_0 = arith.constant 0 : i32
    %c0_i32_1 = arith.constant 0 : i32
    return %c0_i32, %c0_i32_0 : i32, i32
  }
  func.func @transform_12(%arg0: i32) -> (i32, i32) {
    %c0_i32 = arith.constant 0 : i32
    %c0_i32_0 = arith.constant 0 : i32
    %c0_i32_1 = arith.constant 0 : i32
    return %c0_i32, %c0_i32_0 : i32, i32
  }
  func.func @transform_13(%arg0: i32) -> (i32, i32) {
    %c0_i32 = arith.constant 0 : i32
    %c0_i32_0 = arith.constant 0 : i32
    %c0_i32_1 = arith.constant 0 : i32
    return %c0_i32, %c0_i32_0 : i32, i32
  }
  func.func @transform_14(%arg0: i32) -> (i32, i32) {
    %c0_i32 = arith.constant 0 : i32
    %c0_i32_0 = arith.constant 0 : i32
    %c0_i32_1 = arith.constant 0 : i32
    return %c0_i32, %c0_i32_0 : i32, i32
  }
  func.func @transform_15(%arg0: i32) -> (i32, i32) {
    %c0_i32 = arith.constant 0 : i32
    %c0_i32_0 = arith.constant 0 : i32
    %c0_i32_1 = arith.constant 0 : i32
    return %c0_i32, %c0_i32_0 : i32, i32
  }
  func.func @transform_16(%arg0: i32) -> (i32, i32) {
    %c0_i32 = arith.constant 0 : i32
    %c0_i32_0 = arith.constant 0 : i32
    %c0_i32_1 = arith.constant 0 : i32
    return %c0_i32, %c0_i32_0 : i32, i32
  }
  func.func @transform_17(%arg0: i32) -> (i32, i32) {
    %c0_i32 = arith.constant 0 : i32
    %c0_i32_0 = arith.constant 0 : i32
    return %arg0, %c0_i32 : i32, i32
  }
}

</mosaic_0001>

<bundles_post_ra>
// kernel: tpu_custom_call.1
= control target key start
LH: loop header
LB: loop body
LE: loop exit
PB: predicated region body
PF: predicated region fallthrough
CT: control target
= control target key end

     0   :  { %s2109_s0 = inlined_call_operand.hbm [shape: bf16[16,64], index: 0, kind: input, shape index: {}]   ;;  %s2110_s1 = inlined_call_operand.hbm [shape: bf16[64,128], index: 1, kind: input, shape index: {}]   ;;  %s2111_s2 = inlined_call_operand.vmem [shape: f32[1,128], index: 2, kind: input, shape index: {}]   ;;  %s2112_s3 = inlined_call_operand.hbm [shape: bf16[128,128], index: 3, kind: input, shape index: {}]   ;;  %s2113_s4 = inlined_call_operand.vmem [shape: f32[1,128], index: 4, kind: input, shape index: {}]   ;;  %s2114_s5 = inlined_call_operand.hbm [shape: bf16[128,128], index: 5, kind: input, shape index: {}]   ;;  %s2115_s6 = inlined_call_operand.vmem [shape: f32[1,128], index: 6, kind: input, shape index: {}]   ;;  %s2116_s7 = inlined_call_operand.hbm [shape: bf16[128,128], index: 7, kind: input, shape index: {}]   ;;  %s2117_s8 = inlined_call_operand.vmem [shape: f32[1,128], index: 8, kind: input, shape index: {}]   ;;  %s2118_s9 = inlined_call_operand.hbm [shape: bf16[128,128], index: 9, kind: input, shape index: {}]   ;;  %s2119_s10 = inlined_call_operand.vmem [shape: f32[1,128], index: 10, kind: input, shape index: {}]   ;;  %s2120_s11 = inlined_call_operand.hbm [shape: bf16[128,128], index: 11, kind: input, shape index: {}]   ;;  %s2121_s12 = inlined_call_operand.vmem [shape: f32[1,128], index: 12, kind: input, shape index: {}]   ;;  %s2122_s13 = inlined_call_operand.hbm [shape: bf16[128,128], index: 13, kind: input, shape index: {}]   ;;  %s2123_s14 = inlined_call_operand.vmem [shape: f32[1,128], index: 14, kind: input, shape index: {}]   ;;  %s2124_s15 = inlined_call_operand.hbm [shape: bf16[128,128], index: 15, kind: input, shape index: {}]   ;;  %s2125_s16 = inlined_call_operand.vmem [shape: f32[1,128], index: 16, kind: input, shape index: {}]   ;;  %s2126_s17 = inlined_call_operand.hbm [shape: bf16[16,128], index: 17, kind: output, shape index: {}]  }
   0x1   :  { %2130 = sst [smem:[#allocation24_spill]] %s2109_s0 }
   0x2   :  { %2131 = sst [smem:[#allocation25_spill]] %s2110_s1 }
   0x3   :  { %2132 = sst [smem:[#allocation26_spill]] %s2126_s17 }
   0x4   :  { %22 = vsyncpa [#allocation3], 0 }
   0x5   :  { %23 = vsyncpa [#allocation6], 0 }
   0x6   :  { %24 = vsyncpa [#allocation9], 0 }
   0x7   :  { %25 = vsyncpa [#allocation12], 0 }
   0x8   :  { %26 = vsyncpa [#allocation15], 0 }
   0x9   :  { %27 = vsyncpa [#allocation4], 0  ;;  %s1727_s24 = smov [#allocation5]   ;;  %s1728_s26 = smov [#allocation8]  }
   0xa   :  { %s45_s25 = sshll.u32 %s1727_s24, 4  ;;  %s73_s27 = sshll.u32 %s1728_s26, 4  ;;  %s46_s25 = int_to_ptr.vmem [resolvable:$true] %s45_s25  ;;  %s1831_s27 = int_to_ptr.vmem [resolvable:$true] %s73_s27 }
   0xb   :  { %s2133_s0 = sld [smem:[#allocation25_spill]] }
  0x11   :  { %s1495_s30 = scalar_lea.hbm %s2133_s0, 512 }
  0x12   :  { %p1496_p0 = scmp.ne.s32.totalorder %s2133_s0, %s1495_s30  ;;  %p1499_p1 = scmp.lt.u32.totalorder %s1495_s30, %s2133_s0 }
  0x14   :  { %p1501_p2 = pnand %p1499_p1, %p1496_p0 }
  0x16   :  { %1504 = shalt.err (!%p1501_p2)
}
  0x17   :  { %s1505_s21 = scalar_lea.vmem %s46_s25, 512  ;;  %p1510_p4 = scmp.lt.s32.totalorder %s46_s25, %s46_s25 }
  0x18   :  { %p1506_p3 = scmp.ne.s32.totalorder %s46_s25, %s1505_s21  ;;  %p1511_p5 = scmp.lt.s32.totalorder %s1505_s21, %s1505_s21 }
  0x1a   :  { %p1512_p6 = por %p1511_p5, %p1510_p4 }
  0x1c   :  { %p1513_p7 = pnand %p1512_p6, %p1506_p3 }
  0x1e   :  { %1516 = shalt.err (!%p1513_p7)
}
  0x1f   :  { %s1729_s22 = smov 64   ;;  %s1730_s23 = smov 4  }
  0x20   :  { %51 = dma.hbm_to_vmem [thread:$0]  %s2133_s0, 512, %s46_s25, [#allocation6], %s1729_s22, %s1729_s22, %s1730_s23  }
  0x21   :  { %s1517_s30 = scalar_lea.hbm %s2114_s5, 1024 }
  0x22   :  { %p1518_p8 = scmp.ne.s32.totalorder %s2114_s5, %s1517_s30  ;;  %p1521_p9 = scmp.lt.u32.totalorder %s1517_s30, %s2114_s5 }
  0x24   :  { %p1523_p10 = pnand %p1521_p9, %p1518_p8 }
  0x26   :  { %1526 = shalt.err (!%p1523_p10)
}
  0x27   :  { %s1527_s21 = scalar_lea.vmem %s1831_s27, 1024  ;;  %p1532_p12 = scmp.lt.s32.totalorder %s1831_s27, %s1831_s27 }
  0x28   :  { %p1528_p11 = scmp.ne.s32.totalorder %s1831_s27, %s1527_s21  ;;  %p1533_p13 = scmp.lt.s32.totalorder %s1527_s21, %s1527_s21 }
  0x2a   :  { %p1534_p0 = por %p1533_p13, %p1532_p12 }
  0x2c   :  { %p1535_p1 = pnand %p1534_p0, %p1528_p11 }
  0x2e   :  { %1538 = shalt.err (!%p1535_p1)
}
  0x2f   :  { %79 = dma.hbm_to_vmem [thread:$0]  %s2114_s5, 1024, %s1831_s27, [#allocation9], %s1729_s22, %s1729_s22, %s1730_s23  }
  0x30   :  { %s1731_s24 = smov [#allocation11]   ;;  %s1732_s28 = smov [#allocation14]  }
  0x31   :  { %s101_s26 = sshll.u32 %s1731_s24, 4  ;;  %s129_s29 = sshll.u32 %s1732_s28, 4  ;;  %s102_s26 = int_to_ptr.vmem [resolvable:$true] %s101_s26  ;;  %s1868_s29 = int_to_ptr.vmem [resolvable:$true] %s129_s29 }
  0x32   :  { %s1539_s19 = scalar_lea.hbm %s2118_s9, 1024 }
  0x33   :  { %p1540_p2 = scmp.ne.s32.totalorder %s2118_s9, %s1539_s19  ;;  %p1543_p3 = scmp.lt.u32.totalorder %s1539_s19, %s2118_s9 }
  0x35   :  { %p1545_p4 = pnand %p1543_p3, %p1540_p2 }
  0x37   :  { %1548 = shalt.err (!%p1545_p4)
}
  0x38   :  { %s1549_s5 = scalar_lea.vmem %s102_s26, 1024  ;;  %p1554_p6 = scmp.lt.s32.totalorder %s102_s26, %s102_s26 }
  0x39   :  { %p1550_p5 = scmp.ne.s32.totalorder %s102_s26, %s1549_s5  ;;  %p1555_p7 = scmp.lt.s32.totalorder %s1549_s5, %s1549_s5 }
  0x3b   :  { %p1556_p8 = por %p1555_p7, %p1554_p6 }
  0x3d   :  { %p1557_p9 = pnand %p1556_p8, %p1550_p5 }
  0x3f   :  { %1560 = shalt.err (!%p1557_p9)
}
  0x40   :  { %107 = dma.hbm_to_vmem [thread:$0]  %s2118_s9, 1024, %s102_s26, [#allocation12], %s1729_s22, %s1729_s22, %s1730_s23  }
  0x41   :  { %s1561_s17 = scalar_lea.hbm %s2122_s13, 1024 }
  0x42   :  { %p1562_p10 = scmp.ne.s32.totalorder %s2122_s13, %s1561_s17  ;;  %p1565_p11 = scmp.lt.u32.totalorder %s1561_s17, %s2122_s13 }
  0x44   :  { %p1567_p12 = pnand %p1565_p11, %p1562_p10 }
  0x46   :  { %1570 = shalt.err (!%p1567_p12)
}
  0x47   :  { %s1571_s1 = scalar_lea.vmem %s1868_s29, 1024  ;;  %p1576_p0 = scmp.lt.s32.totalorder %s1868_s29, %s1868_s29 }
  0x48   :  { %p1572_p13 = scmp.ne.s32.totalorder %s1868_s29, %s1571_s1  ;;  %p1577_p1 = scmp.lt.s32.totalorder %s1571_s1, %s1571_s1 }
  0x4a   :  { %p1578_p2 = por %p1577_p1, %p1576_p0 }
  0x4c   :  { %p1579_p3 = pnand %p1578_p2, %p1572_p13 }
  0x4e   :  { %1582 = shalt.err (!%p1579_p3)
}
  0x4f   :  { %135 = dma.hbm_to_vmem [thread:$0]  %s2122_s13, 1024, %s1868_s29, [#allocation15], %s1729_s22, %s1729_s22, %s1730_s23  }
  0x50   :  { %s1733_s20 = smov [#allocation2]   ;;  %s1734_s5 = smov [#allocation7]  }
  0x51   :  { %s33_s21 = sshll.u32 %s1733_s20, 4  ;;  %s59_s27 = sshll.u32 %s1734_s5, 4  ;;  %s34_s21 = int_to_ptr.vmem [resolvable:$true] %s33_s21  ;;  %s1905_s27 = int_to_ptr.vmem [resolvable:$true] %s59_s27 }
  0x52   :  { %s2134_s24 = sld [smem:[#allocation24_spill]] }
  0x58   :  { %s1583_s17 = scalar_lea.hbm %s2134_s24, 128 }
  0x59   :  { %p1584_p4 = scmp.ne.s32.totalorder %s2134_s24, %s1583_s17  ;;  %p1587_p5 = scmp.lt.u32.totalorder %s1583_s17, %s2134_s24 }
  0x5b   :  { %p1589_p6 = pnand %p1587_p5, %p1584_p4 }
  0x5d   :  { %1592 = shalt.err (!%p1589_p6)
}
  0x5e   :  { %s1593_s13 = scalar_lea.vmem %s34_s21, 128  ;;  %p1598_p8 = scmp.lt.s32.totalorder %s34_s21, %s34_s21 }
  0x5f   :  { %p1594_p7 = scmp.ne.s32.totalorder %s34_s21, %s1593_s13  ;;  %p1599_p9 = scmp.lt.s32.totalorder %s1593_s13, %s1593_s13 }
  0x61   :  { %p1600_p10 = por %p1599_p9, %p1598_p8 }
  0x63   :  { %p1601_p11 = pnand %p1600_p10, %p1594_p7 }
  0x65   :  { %1604 = shalt.err (!%p1601_p11)
}
  0x66   :  { %39 = dma.hbm_to_vmem [thread:$0]  %s2134_s24, 128, %s34_s21, [#allocation3], %s1729_s22, %s1729_s22, %s1730_s23  }
  0x67   :  { %s1605_s20 = scalar_lea.hbm %s2112_s3, 1024 }
  0x68   :  { %p1606_p12 = scmp.ne.s32.totalorder %s2112_s3, %s1605_s20  ;;  %p1609_p13 = scmp.lt.u32.totalorder %s1605_s20, %s2112_s3 }
  0x6a   :  { %p1611_p0 = pnand %p1609_p13, %p1606_p12 }
  0x6c   :  { %1614 = shalt.err (!%p1611_p0)
}
  0x6d   :  { %s1615_s28 = scalar_lea.vmem %s1905_s27, 1024  ;;  %p1620_p2 = scmp.lt.s32.totalorder %s1905_s27, %s1905_s27 }
  0x6e   :  { %p1616_p1 = scmp.ne.s32.totalorder %s1905_s27, %s1615_s28  ;;  %p1621_p3 = scmp.lt.s32.totalorder %s1615_s28, %s1615_s28 }
  0x70   :  { %p1622_p4 = por %p1621_p3, %p1620_p2 }
  0x72   :  { %p1623_p5 = pnand %p1622_p4, %p1616_p1 }
  0x74   :  { %1626 = shalt.err (!%p1623_p5)
}
  0x75   :  { %65 = dma.hbm_to_vmem [thread:$0]  %s2112_s3, 1024, %s1905_s27, [#allocation6], %s1729_s22, %s1729_s22, %s1730_s23  }
  0x76   :  { %s1735_s30 = smov [#allocation10]   ;;  %s1736_s19 = smov [#allocation13]  }
  0x77   :  { %s87_s18 = sshll.u32 %s1735_s30, 4  ;;  %s115_s13 = sshll.u32 %s1736_s19, 4  ;;  %s88_s18 = int_to_ptr.vmem [resolvable:$true] %s87_s18  ;;  %s1942_s13 = int_to_ptr.vmem [resolvable:$true] %s115_s13 }
  0x78   :  { %s1627_s9 = scalar_lea.hbm %s2116_s7, 1024 }
  0x79   :  { %p1628_p6 = scmp.ne.s32.totalorder %s2116_s7, %s1627_s9  ;;  %p1631_p7 = scmp.lt.u32.totalorder %s1627_s9, %s2116_s7 }
  0x7b   :  { %p1633_p8 = pnand %p1631_p7, %p1628_p6 }
  0x7d   :  { %1636 = shalt.err (!%p1633_p8)
}
  0x7e   :  { %s1637_s3 = scalar_lea.vmem %s88_s18, 1024  ;;  %p1642_p10 = scmp.lt.s32.totalorder %s88_s18, %s88_s18 }
  0x7f   :  { %p1638_p9 = scmp.ne.s32.totalorder %s88_s18, %s1637_s3  ;;  %p1643_p11 = scmp.lt.s32.totalorder %s1637_s3, %s1637_s3 }
  0x81   :  { %p1644_p12 = por %p1643_p11, %p1642_p10 }
  0x83   :  { %p1645_p13 = pnand %p1644_p12, %p1638_p9 }
  0x85   :  { %1648 = shalt.err (!%p1645_p13)
}
  0x86   :  { %93 = dma.hbm_to_vmem [thread:$0]  %s2116_s7, 1024, %s88_s18, [#allocation9], %s1729_s22, %s1729_s22, %s1730_s23  }
  0x87   :  { %s1649_s21 = scalar_lea.hbm %s2120_s11, 1024 }
  0x88   :  { %p1650_p0 = scmp.ne.s32.totalorder %s2120_s11, %s1649_s21  ;;  %p1653_p1 = scmp.lt.u32.totalorder %s1649_s21, %s2120_s11 }
  0x8a   :  { %p1655_p2 = pnand %p1653_p1, %p1650_p0 }
  0x8c   :  { %1658 = shalt.err (!%p1655_p2)
}
  0x8d   :  { %s1659_s1 = scalar_lea.vmem %s1942_s13, 1024  ;;  %p1664_p4 = scmp.lt.s32.totalorder %s1942_s13, %s1942_s13 }
  0x8e   :  { %p1660_p3 = scmp.ne.s32.totalorder %s1942_s13, %s1659_s1  ;;  %p1665_p5 = scmp.lt.s32.totalorder %s1659_s1, %s1659_s1 }
  0x90   :  { %p1666_p6 = por %p1665_p5, %p1664_p4 }
  0x92   :  { %p1667_p7 = pnand %p1666_p6, %p1660_p3 }
  0x94   :  { %1670 = shalt.err (!%p1667_p7)
}
  0x95   :  { %121 = dma.hbm_to_vmem [thread:$0]  %s2120_s11, 1024, %s1942_s13, [#allocation12], %s1729_s22, %s1729_s22, %s1730_s23  }
  0x96   :  { %s1737_s9 = smov [#allocation16]   ;;  %s1671_s25 = scalar_lea.hbm %s2124_s15, 1024 }
  0x97   :  { %s143_s26 = sshll.u32 %s1737_s9, 4  ;;  %p1672_p8 = scmp.ne.s32.totalorder %s2124_s15, %s1671_s25  ;;  %s144_s26 = int_to_ptr.vmem [resolvable:$true] %s143_s26 }
  0x98   :  { %p1675_p9 = scmp.lt.u32.totalorder %s1671_s25, %s2124_s15 }
  0x9a   :  { %p1677_p10 = pnand %p1675_p9, %p1672_p8 }
  0x9c   :  { %1680 = shalt.err (!%p1677_p10)
}
  0x9d   :  { %s1681_s28 = scalar_lea.vmem %s144_s26, 1024  ;;  %p1686_p12 = scmp.lt.s32.totalorder %s144_s26, %s144_s26 }
  0x9e   :  { %p1682_p11 = scmp.ne.s32.totalorder %s144_s26, %s1681_s28  ;;  %p1687_p13 = scmp.lt.s32.totalorder %s1681_s28, %s1681_s28 }
  0xa0   :  { %p1688_p0 = por %p1687_p13, %p1686_p12 }
  0xa2   :  { %p1689_p1 = pnand %p1688_p0, %p1682_p11 }
  0xa4   :  { %1692 = shalt.err (!%p1689_p1)
}
  0xa5   :  { %149 = dma.hbm_to_vmem [thread:$0]  %s2124_s15, 1024, %s144_s26, [#allocation15], %s1729_s22, %s1729_s22, %s1730_s23  }
  0xa6   :  { %1715 = dma.done.wait [#allocation3], 128  }
  0xa7   :  { %1716 = vsyncadd [#allocation3], 4294967168 }
  0xa8   :  { %1717 = dma.done.wait [#allocation6], 1536  }
  0xa9   :  { %1718 = vsyncadd [#allocation6], 4294965760 }
  0xaa   :  { %1719 = dma.done.wait [#allocation9], 2048  }
  0xab   :  { %1720 = vsyncadd [#allocation9], 4294965248 }
  0xac   :  { %1721 = dma.done.wait [#allocation12], 2048  }
  0xad   :  { %1722 = vsyncadd [#allocation12], 4294965248 }
  0xae   :  { %1723 = dma.done.wait [#allocation15], 2048  }
  0xaf   :  { %1724 = vsyncadd [#allocation15], 4294965248  ;;  %v1738_v0 = vmov 0.0   ;;  %vm1739_vm0 = vmmov 0   ;;  %v1434_v1 = vld [vmem:[#allocation5] sm:$0xff]   ;;  %v1435_v2 = vld [vmem:[#allocation5 + $0x8] sm:$0xff]  }
  0xb0   :  { %1268 = vmatprep.subr.bf16.mxu0 %v1738_v0  ;;  %1276 = vmatprep.mubr.msk.bf16.mxu0 %vm1739_vm0, %v1738_v0  ;;  %v1439_v3 = vld [vmem:[#allocation7] sm:$0xff]   ;;  %v1436_v4 = vld [vmem:[#allocation5 + $0x10] sm:$0xff]   ;;  %v1440_v5 = vld [vmem:[#allocation7 + $0x8] sm:$0xff]   ;;  %vm226_vm1 = vcmask 523264  }
  0xb1   :  { %1280 = vmatprep.subr.bf16.mxu1 %v1738_v0  ;;  %1296 = vmatprep.mubr.msk.bf16.mxu1 %vm1739_vm0, %v1738_v0  ;;  %v1437_v6 = vld [vmem:[#allocation5 + $0x18] sm:$0xff]   ;;  %v1441_v7 = vld [vmem:[#allocation7 + $0x10] sm:$0xff]   ;;  %v1443_v10 = vld [vmem:[#allocation7 + $0x20] sm:$0xff]  }
  0xb2   :  { %1269 = vmatpush3.bf16.msra.mxu0 %v1434_v1  ;;  %1281 = vmatpush3.bf16.msra.mxu1 %v1439_v3  ;;  %v1438_v8 = vld [vmem:[#allocation2] sm:$0xff]   ;;  %v1444_v11 = vld [vmem:[#allocation7 + $0x28] sm:$0xff]   ;;  %v1445_v12 = vld [vmem:[#allocation7 + $0x30] sm:$0xff]  }
  0xb3   :  { %1270 = vmatprep.subr.bf16.mxu0 %v1738_v0  ;;  %1282 = vmatprep.subr.bf16.mxu1 %v1738_v0  ;;  %v1442_v9 = vld [vmem:[#allocation7 + $0x18] sm:$0xff]   ;;  %v1447_v14 = vld [vmem:[#allocation8] sm:$0xff]   ;;  %v1448_v15 = vld [vmem:[#allocation8 + $0x8] sm:$0xff]  }
  0xb4   :  { %v1446_v13 = vld [vmem:[#allocation7 + $0x38] sm:$0xff]   ;;  %v1449_v16 = vld [vmem:[#allocation8 + $0x10] sm:$0xff]   ;;  %v1451_v18 = vld [vmem:[#allocation8 + $0x20] sm:$0xff]  }
  0xb5   :  { %v1450_v17 = vld [vmem:[#allocation8 + $0x18] sm:$0xff]   ;;  %v1452_v31 = vld [vmem:[#allocation8 + $0x28] sm:$0xff]   ;;  %v1453_v32 = vld [vmem:[#allocation8 + $0x30] sm:$0xff]  }
  0xb6   :  { %1271 = vmatpush3.bf16.msra.mxu0 %v1435_v2  ;;  %1283 = vmatpush3.bf16.msra.mxu1 %v1440_v5  ;;  %v1121_v19 = vld [vmem:[%s2111_s2] ss:$0 sm:$0xff]  ;;  %v1455_v34 = vld [vmem:[#allocation10] sm:$0xff]   ;;  %v1456_v35 = vld [vmem:[#allocation10 + $0x8] sm:$0xff]  }
  0xb7   :  { %1272 = vmatprep.subr.bf16.mxu0 %v1738_v0  ;;  %1284 = vmatprep.subr.bf16.mxu1 %v1738_v0  ;;  %v1454_v33 = vld [vmem:[#allocation8 + $0x38] sm:$0xff]   ;;  %v1457_v36 = vld [vmem:[#allocation10 + $0x10] sm:$0xff]   ;;  %v1459_v38 = vld [vmem:[#allocation10 + $0x20] sm:$0xff]  }
  0xb8   :  { %v1458_v37 = vld [vmem:[#allocation10 + $0x18] sm:$0xff]   ;;  %v1460_v51 = vld [vmem:[#allocation10 + $0x28] sm:$0xff]   ;;  %v1461_v52 = vld [vmem:[#allocation10 + $0x30] sm:$0xff]  }
  0xb9   :  { %v1128_v39 = vld [vmem:[%s2113_s4] ss:$0 sm:$0xff]  ;;  %v1463_v54 = vld [vmem:[#allocation11] sm:$0xff]   ;;  %v1464_v55 = vld [vmem:[#allocation11 + $0x8] sm:$0xff]  }
  0xba   :  { %1273 = vmatpush3.bf16.msra.mxu0 %v1436_v4  ;;  %1285 = vmatpush3.bf16.msra.mxu1 %v1441_v7  ;;  %v1462_v53 = vld [vmem:[#allocation10 + $0x38] sm:$0xff]   ;;  %v1465_v56 = vld [vmem:[#allocation11 + $0x10] sm:$0xff]   ;;  %v1467_v58 = vld [vmem:[#allocation11 + $0x20] sm:$0xff]  }
  0xbb   :  { %1274 = vmatprep.subr.bf16.mxu0 %v1738_v0  ;;  %1286 = vmatprep.subr.bf16.mxu1 %v1738_v0  ;;  %v1466_v57 = vld [vmem:[#allocation11 + $0x18] sm:$0xff]  }
  0xbc   :  { %v1137_v59 = vld [vmem:[%s2115_s6] ss:$0 sm:$0xff] }
  0xbe   :  { %1275 = vmatpush3.bf16.msra.mxu0 %v1437_v6  ;;  %1287 = vmatpush3.bf16.msra.mxu1 %v1442_v9  ;;  %v1469_v9 = vld [vmem:[#allocation11 + $0x30] sm:$0xff]  }
  0xbf   :  { %1300 = vmatprep.subr.bf16.mxu0 %v1738_v0  ;;  %1288 = vmatprep.subr.bf16.mxu1 %v1738_v0 }
  0xc1   :  { %1277 = vmatmul.mubr.msk.bf16.vlgmr.msra.gmra.mrb[0].mxu0 %vm226_vm1, %v1438_v8  ;;  %v1468_v8 = vld [vmem:[#allocation11 + $0x28] sm:$0xff]  }
  0xc2   :  { %1316 = vmatprep.mubr.msk.bf16.mxu0 %vm1739_vm0, %v1738_v0  ;;  %1289 = vmatpush3.bf16.msra.mxu1 %v1443_v10  ;;  %v1470_v10 = vld [vmem:[#allocation11 + $0x38] sm:$0xff]  }
  0xc3   :  { %1290 = vmatprep.subr.bf16.mxu1 %v1738_v0  ;;  %1301 = vmatpush3.bf16.msra.mxu0 %v1447_v14  ;;  %v1474_v14 = vld [vmem:[#allocation13 + $0x18] sm:$0xff]  }
  0xc4   :  { %1302 = vmatprep.subr.bf16.mxu0 %v1738_v0 }
  0xc6   :  { %1291 = vmatpush3.bf16.msra.mxu1 %v1444_v11  ;;  %v1471_v11 = vld [vmem:[#allocation13] sm:$0xff]  }
  0xc7   :  { %1292 = vmatprep.subr.bf16.mxu1 %v1738_v0  ;;  %1303 = vmatpush3.bf16.msra.mxu0 %v1448_v15  ;;  %v1475_v15 = vld [vmem:[#allocation13 + $0x20] sm:$0xff]  }
  0xc8   :  { %1304 = vmatprep.subr.bf16.mxu0 %v1738_v0 }
  0xca   :  { %1293 = vmatpush3.bf16.msra.mxu1 %v1445_v12  ;;  %v1472_v12 = vld [vmem:[#allocation13 + $0x8] sm:$0xff]  }
  0xcb   :  { %1294 = vmatprep.subr.bf16.mxu1 %v1738_v0  ;;  %1305 = vmatpush3.bf16.msra.mxu0 %v1449_v16  ;;  %v1146_v16 = vld [vmem:[%s2117_s8] ss:$0 sm:$0xff] }
  0xcc   :  { %1306 = vmatprep.subr.bf16.mxu0 %v1738_v0 }
  0xce   :  { %1295 = vmatpush3.bf16.msra.mxu1 %v1446_v13  ;;  %v1473_v13 = vld [vmem:[#allocation13 + $0x10] sm:$0xff]  }
  0xcf   :  { %1320 = vmatprep.subr.bf16.mxu1 %v1738_v0  ;;  %1307 = vmatpush3.bf16.msra.mxu0 %v1450_v17 }
  0xd0   :  { %1308 = vmatprep.subr.bf16.mxu0 %v1738_v0 }
  0xd3   :  { %1309 = vmatpush3.bf16.msra.mxu0 %v1451_v18 }
  0xd4   :  { %1310 = vmatprep.subr.bf16.mxu0 %v1738_v0 }
  0xd7   :  { %1311 = vmatpush3.bf16.msra.mxu0 %v1452_v31  ;;  %v1479_v31 = vld [vmem:[#allocation14] sm:$0xff]  }
  0xd8   :  { %1312 = vmatprep.subr.bf16.mxu0 %v1738_v0 }
  0xdb   :  { %1313 = vmatpush3.bf16.msra.mxu0 %v1453_v32  ;;  %v1480_v32 = vld [vmem:[#allocation14 + $0x8] sm:$0xff]  }
  0xdc   :  { %1314 = vmatprep.subr.bf16.mxu0 %v1738_v0 }
  0xdf   :  { %1315 = vmatpush3.bf16.msra.mxu0 %v1454_v33  ;;  %v1481_v33 = vld [vmem:[#allocation14 + $0x10] sm:$0xff]  }
  0xe0   :  { %1340 = vmatprep.subr.bf16.mxu0 %v1738_v0 }
 0x194   :  { %v264_v20 = vpop.f32.mrb[0].mxu0 }
 0x195   :  { %v265_v21 = vadd.f32 %v1121_v19, %v264_v20  ;;  %v1278_v22 = vpop.f32.mrb[1].mxu0 }
 0x196   :  { %v267_v23 = vpop.f32.mrb[2].mxu0 }
 0x197   :  { %v271_v24 = vmul.f32 0.01, %v265_v21  ;;  %v268_v25 = vadd.f32 %v1121_v19, %v267_v23  ;;  %v1279_v26 = vpop.f32.mrb[3].mxu0 }
 0x199   :  { %v272_v27 = vmul.f32 0.01, %v268_v25  ;;  %v273_v28 = vmax.f32 %v265_v21, %v271_v24 }
 0x19b   :  { %v274_v29 = vmax.f32 %v268_v25, %v272_v27 }
 0x19d   :  { %v275_v30 = vpack.c.bf16 %v274_v29, %v273_v28  ;;  %v1476_v28 = vld [vmem:[#allocation13 + $0x28] sm:$0xff]   ;;  %v1477_v29 = vld [vmem:[#allocation13 + $0x30] sm:$0xff]  }
 0x19f   :  { %1297 = vmatmul.mubr.bf16.vlgmr.msra.gmra.mrb[0].mxu1 %v275_v30  ;;  %v1478_v30 = vld [vmem:[#allocation13 + $0x38] sm:$0xff]  }
 0x1a0   :  { %1336 = vmatprep.mubr.msk.bf16.mxu1 %vm1739_vm0, %v1738_v0  ;;  %1321 = vmatpush3.bf16.msra.mxu1 %v1455_v34  ;;  %v1482_v34 = vld [vmem:[#allocation14 + $0x18] sm:$0xff]  }
 0x1a1   :  { %1322 = vmatprep.subr.bf16.mxu1 %v1738_v0 }
 0x1a4   :  { %1323 = vmatpush3.bf16.msra.mxu1 %v1456_v35  ;;  %v1483_v35 = vld [vmem:[#allocation14 + $0x20] sm:$0xff]  }
 0x1a5   :  { %1324 = vmatprep.subr.bf16.mxu1 %v1738_v0 }
 0x1a8   :  { %1325 = vmatpush3.bf16.msra.mxu1 %v1457_v36  ;;  %v1155_v36 = vld [vmem:[%s2119_s10] ss:$0 sm:$0xff] }
 0x1a9   :  { %1326 = vmatprep.subr.bf16.mxu1 %v1738_v0 }
 0x1ac   :  { %1327 = vmatpush3.bf16.msra.mxu1 %v1458_v37 }
 0x1ad   :  { %1328 = vmatprep.subr.bf16.mxu1 %v1738_v0 }
 0x1b0   :  { %1329 = vmatpush3.bf16.msra.mxu1 %v1459_v38 }
 0x1b1   :  { %1330 = vmatprep.subr.bf16.mxu1 %v1738_v0 }
 0x1b4   :  { %1331 = vmatpush3.bf16.msra.mxu1 %v1460_v51  ;;  %v1487_v51 = vld [vmem:[#allocation16] sm:$0xff]  }
 0x1b5   :  { %1332 = vmatprep.subr.bf16.mxu1 %v1738_v0 }
 0x1b8   :  { %1333 = vmatpush3.bf16.msra.mxu1 %v1461_v52  ;;  %v1488_v52 = vld [vmem:[#allocation16 + $0x8] sm:$0xff]  }
 0x1b9   :  { %1334 = vmatprep.subr.bf16.mxu1 %v1738_v0 }
 0x1bc   :  { %1335 = vmatpush3.bf16.msra.mxu1 %v1462_v53  ;;  %v1489_v53 = vld [vmem:[#allocation16 + $0x10] sm:$0xff]  }
 0x1bd   :  { %1360 = vmatprep.subr.bf16.mxu1 %v1738_v0 }
 0x272   :  { %v381_v40 = vpop.f32.mrb[0].mxu1 }
 0x273   :  { %v382_v41 = vadd.f32 %v1128_v39, %v381_v40  ;;  %v1298_v42 = vpop.f32.mrb[1].mxu1 }
 0x274   :  { %v384_v43 = vpop.f32.mrb[2].mxu1 }
 0x275   :  { %v388_v44 = vmul.f32 0.01, %v382_v41  ;;  %v385_v45 = vadd.f32 %v1128_v39, %v384_v43  ;;  %v1299_v46 = vpop.f32.mrb[3].mxu1 }
 0x277   :  { %v389_v47 = vmul.f32 0.01, %v385_v45  ;;  %v390_v48 = vmax.f32 %v382_v41, %v388_v44 }
 0x279   :  { %v391_v49 = vmax.f32 %v385_v45, %v389_v47 }
 0x27b   :  { %v392_v50 = vpack.c.bf16 %v391_v49, %v390_v48  ;;  %v1484_v48 = vld [vmem:[#allocation14 + $0x28] sm:$0xff]   ;;  %v1485_v49 = vld [vmem:[#allocation14 + $0x30] sm:$0xff]  }
 0x27d   :  { %1317 = vmatmul.mubr.bf16.vlgmr.msra.gmra.mrb[4].mxu0 %v392_v50  ;;  %v1486_v50 = vld [vmem:[#allocation14 + $0x38] sm:$0xff]  }
 0x27e   :  { %1356 = vmatprep.mubr.msk.bf16.mxu0 %vm1739_vm0, %v1738_v0  ;;  %1341 = vmatpush3.bf16.msra.mxu0 %v1463_v54  ;;  %v1490_v54 = vld [vmem:[#allocation16 + $0x18] sm:$0xff]  }
 0x27f   :  { %1342 = vmatprep.subr.bf16.mxu0 %v1738_v0 }
 0x282   :  { %1343 = vmatpush3.bf16.msra.mxu0 %v1464_v55  ;;  %v1491_v55 = vld [vmem:[#allocation16 + $0x20] sm:$0xff]  }
 0x283   :  { %1344 = vmatprep.subr.bf16.mxu0 %v1738_v0 }
 0x286   :  { %1345 = vmatpush3.bf16.msra.mxu0 %v1465_v56  ;;  %v1164_v56 = vld [vmem:[%s2121_s12] ss:$0 sm:$0xff] }
 0x287   :  { %1346 = vmatprep.subr.bf16.mxu0 %v1738_v0 }
 0x28a   :  { %1347 = vmatpush3.bf16.msra.mxu0 %v1466_v57 }
 0x28b   :  { %1348 = vmatprep.subr.bf16.mxu0 %v1738_v0 }
 0x28e   :  { %1349 = vmatpush3.bf16.msra.mxu0 %v1467_v58 }
 0x28f   :  { %1350 = vmatprep.subr.bf16.mxu0 %v1738_v0 }
 0x292   :  { %1351 = vmatpush3.bf16.msra.mxu0 %v1468_v8  ;;  %v1173_v8 = vld [vmem:[%s2123_s14] ss:$0 sm:$0xff]  ;;  %s1740_s14 = smov [#allocation17]  }
 0x293   :  { %1352 = vmatprep.subr.bf16.mxu0 %v1738_v0  ;;  %s1105_s26 = sshll.u32 %s1740_s14, 4  ;;  %s1106_s26 = int_to_ptr.vmem [resolvable:$true] %s1105_s26 }
 0x294   :  { %s1693_s20 = scalar_lea.vmem %s1106_s26, 128  ;;  %p1698_p3 = scmp.lt.s32.totalorder %s1106_s26, %s1106_s26 }
 0x295   :  { %p1694_p2 = scmp.ne.s32.totalorder %s1106_s26, %s1693_s20  ;;  %p1699_p4 = scmp.lt.s32.totalorder %s1693_s20, %s1693_s20 }
 0x296   :  { %1353 = vmatpush3.bf16.msra.mxu0 %v1469_v9 }
 0x297   :  { %1354 = vmatprep.subr.bf16.mxu0 %v1738_v0  ;;  %p1700_p5 = por %p1699_p4, %p1698_p3 }
 0x299   :  { %p1701_p6 = pnand %p1700_p5, %p1694_p2 }
 0x29a   :  { %1355 = vmatpush3.bf16.msra.mxu0 %v1470_v10 }
 0x29b   :  { %1380 = vmatprep.subr.bf16.mxu0 %v1738_v0 }
 0x350   :  { %v498_v60 = vpop.f32.mrb[4].mxu0 }
 0x351   :  { %v499_v61 = vadd.f32 %v1137_v59, %v498_v60  ;;  %v1318_v62 = vpop.f32.mrb[5].mxu0 }
 0x352   :  { %v501_v63 = vpop.f32.mrb[6].mxu0 }
 0x353   :  { %v505_v1 = vmul.f32 0.01, %v499_v61  ;;  %v502_v2 = vadd.f32 %v1137_v59, %v501_v63  ;;  %v1319_v3 = vpop.f32.mrb[7].mxu0 }
 0x355   :  { %v506_v4 = vmul.f32 0.01, %v502_v2  ;;  %v507_v5 = vmax.f32 %v499_v61, %v505_v1 }
 0x357   :  { %v508_v6 = vmax.f32 %v502_v2, %v506_v4 }
 0x359   :  { %v509_v7 = vpack.c.bf16 %v508_v6, %v507_v5  ;;  %v1492_v5 = vld [vmem:[#allocation16 + $0x28] sm:$0xff]   ;;  %v1493_v6 = vld [vmem:[#allocation16 + $0x30] sm:$0xff]  }
 0x35b   :  { %1337 = vmatmul.mubr.bf16.vlgmr.msra.gmra.mrb[4].mxu1 %v509_v7  ;;  %v1494_v7 = vld [vmem:[#allocation16 + $0x38] sm:$0xff]  }
 0x35c   :  { %1376 = vmatprep.mubr.msk.bf16.mxu1 %vm1739_vm0, %v1738_v0  ;;  %1361 = vmatpush3.bf16.msra.mxu1 %v1471_v11 }
 0x35d   :  { %1362 = vmatprep.subr.bf16.mxu1 %v1738_v0 }
 0x360   :  { %1363 = vmatpush3.bf16.msra.mxu1 %v1472_v12 }
 0x361   :  { %1364 = vmatprep.subr.bf16.mxu1 %v1738_v0 }
 0x364   :  { %1365 = vmatpush3.bf16.msra.mxu1 %v1473_v13 }
 0x365   :  { %1366 = vmatprep.subr.bf16.mxu1 %v1738_v0 }
 0x368   :  { %1367 = vmatpush3.bf16.msra.mxu1 %v1474_v14 }
 0x369   :  { %1368 = vmatprep.subr.bf16.mxu1 %v1738_v0 }
 0x36c   :  { %1369 = vmatpush3.bf16.msra.mxu1 %v1475_v15 }
 0x36d   :  { %1370 = vmatprep.subr.bf16.mxu1 %v1738_v0 }
 0x370   :  { %1371 = vmatpush3.bf16.msra.mxu1 %v1476_v28 }
 0x371   :  { %1372 = vmatprep.subr.bf16.mxu1 %v1738_v0 }
 0x374   :  { %1373 = vmatpush3.bf16.msra.mxu1 %v1477_v29 }
 0x375   :  { %1374 = vmatprep.subr.bf16.mxu1 %v1738_v0 }
 0x378   :  { %1375 = vmatpush3.bf16.msra.mxu1 %v1478_v30 }
 0x379   :  { %1400 = vmatprep.subr.bf16.mxu1 %v1738_v0 }
 0x42e   :  { %v615_v17 = vpop.f32.mrb[4].mxu1 }
 0x42f   :  { %v616_v18 = vadd.f32 %v1146_v16, %v615_v17  ;;  %v1338_v19 = vpop.f32.mrb[5].mxu1 }
 0x430   :  { %v618_v20 = vpop.f32.mrb[6].mxu1 }
 0x431   :  { %v622_v21 = vmul.f32 0.01, %v616_v18  ;;  %v619_v22 = vadd.f32 %v1146_v16, %v618_v20  ;;  %v1339_v23 = vpop.f32.mrb[7].mxu1 }
 0x433   :  { %v623_v24 = vmul.f32 0.01, %v619_v22  ;;  %v624_v25 = vmax.f32 %v616_v18, %v622_v21 }
 0x435   :  { %v625_v26 = vmax.f32 %v619_v22, %v623_v24 }
 0x437   :  { %v626_v27 = vpack.c.bf16 %v625_v26, %v624_v25 }
 0x439   :  { %1357 = vmatmul.mubr.bf16.vlgmr.msra.gmra.mrb[8].mxu0 %v626_v27 }
 0x43a   :  { %1396 = vmatprep.mubr.msk.bf16.mxu0 %vm1739_vm0, %v1738_v0  ;;  %1381 = vmatpush3.bf16.msra.mxu0 %v1479_v31 }
 0x43b   :  { %1382 = vmatprep.subr.bf16.mxu0 %v1738_v0 }
 0x43e   :  { %1383 = vmatpush3.bf16.msra.mxu0 %v1480_v32 }
 0x43f   :  { %1384 = vmatprep.subr.bf16.mxu0 %v1738_v0 }
 0x442   :  { %1385 = vmatpush3.bf16.msra.mxu0 %v1481_v33 }
 0x443   :  { %1386 = vmatprep.subr.bf16.mxu0 %v1738_v0 }
 0x446   :  { %1387 = vmatpush3.bf16.msra.mxu0 %v1482_v34 }
 0x447   :  { %1388 = vmatprep.subr.bf16.mxu0 %v1738_v0 }
 0x44a   :  { %1389 = vmatpush3.bf16.msra.mxu0 %v1483_v35 }
 0x44b   :  { %1390 = vmatprep.subr.bf16.mxu0 %v1738_v0 }
 0x44e   :  { %1391 = vmatpush3.bf16.msra.mxu0 %v1484_v48 }
 0x44f   :  { %1392 = vmatprep.subr.bf16.mxu0 %v1738_v0 }
 0x452   :  { %1393 = vmatpush3.bf16.msra.mxu0 %v1485_v49 }
 0x453   :  { %1394 = vmatprep.subr.bf16.mxu0 %v1738_v0 }
 0x456   :  { %1395 = vmatpush3.bf16.msra.mxu0 %v1486_v50 }
 0x50c   :  { %v732_v37 = vpop.f32.mrb[8].mxu0 }
 0x50d   :  { %v733_v38 = vadd.f32 %v1155_v36, %v732_v37  ;;  %v1358_v39 = vpop.f32.mrb[9].mxu0 }
 0x50e   :  { %v735_v40 = vpop.f32.mrb[10].mxu0 }
 0x50f   :  { %v739_v41 = vmul.f32 0.01, %v733_v38  ;;  %v736_v42 = vadd.f32 %v1155_v36, %v735_v40  ;;  %v1359_v43 = vpop.f32.mrb[11].mxu0 }
 0x511   :  { %v740_v44 = vmul.f32 0.01, %v736_v42  ;;  %v741_v45 = vmax.f32 %v733_v38, %v739_v41 }
 0x513   :  { %v742_v46 = vmax.f32 %v736_v42, %v740_v44 }
 0x515   :  { %v743_v47 = vpack.c.bf16 %v742_v46, %v741_v45 }
 0x517   :  { %1377 = vmatmul.mubr.bf16.vlgmr.msra.gmra.mrb[8].mxu1 %v743_v47 }
 0x518   :  { %1416 = vmatprep.mubr.msk.bf16.mxu1 %vm1739_vm0, %v1738_v0  ;;  %1401 = vmatpush3.bf16.msra.mxu1 %v1487_v51 }
 0x519   :  { %1402 = vmatprep.subr.bf16.mxu1 %v1738_v0 }
 0x51c   :  { %1403 = vmatpush3.bf16.msra.mxu1 %v1488_v52 }
 0x51d   :  { %1404 = vmatprep.subr.bf16.mxu1 %v1738_v0 }
 0x520   :  { %1405 = vmatpush3.bf16.msra.mxu1 %v1489_v53 }
 0x521   :  { %1406 = vmatprep.subr.bf16.mxu1 %v1738_v0 }
 0x524   :  { %1407 = vmatpush3.bf16.msra.mxu1 %v1490_v54 }
 0x525   :  { %1408 = vmatprep.subr.bf16.mxu1 %v1738_v0 }
 0x528   :  { %1409 = vmatpush3.bf16.msra.mxu1 %v1491_v55 }
 0x529   :  { %1410 = vmatprep.subr.bf16.mxu1 %v1738_v0 }
 0x52c   :  { %1411 = vmatpush3.bf16.msra.mxu1 %v1492_v5 }
 0x52d   :  { %1412 = vmatprep.subr.bf16.mxu1 %v1738_v0 }
 0x530   :  { %1413 = vmatpush3.bf16.msra.mxu1 %v1493_v6 }
 0x531   :  { %1414 = vmatprep.subr.bf16.mxu1 %v1738_v0  ;;  %v1182_v0 = vld [vmem:[%s2125_s16] ss:$0 sm:$0xff] }
 0x534   :  { %1415 = vmatpush3.bf16.msra.mxu1 %v1494_v7 }
 0x5ea   :  { %v849_v57 = vpop.f32.mrb[8].mxu1 }
 0x5eb   :  { %v850_v58 = vadd.f32 %v1164_v56, %v849_v57  ;;  %v1378_v59 = vpop.f32.mrb[9].mxu1 }
 0x5ec   :  { %v852_v60 = vpop.f32.mrb[10].mxu1 }
 0x5ed   :  { %v856_v61 = vmul.f32 0.01, %v850_v58  ;;  %v853_v62 = vadd.f32 %v1164_v56, %v852_v60  ;;  %v1379_v63 = vpop.f32.mrb[11].mxu1 }
 0x5ef   :  { %v857_v1 = vmul.f32 0.01, %v853_v62  ;;  %v858_v2 = vmax.f32 %v850_v58, %v856_v61 }
 0x5f1   :  { %v859_v3 = vmax.f32 %v853_v62, %v857_v1 }
 0x5f3   :  { %v860_v4 = vpack.c.bf16 %v859_v3, %v858_v2 }
 0x5f5   :  { %1397 = vmatmul.mubr.bf16.vlgmr.msra.gmra.mrb[12].mxu0 %v860_v4 }
 0x6c8   :  { %v966_v9 = vpop.f32.mrb[12].mxu0 }
 0x6c9   :  { %v967_v10 = vadd.f32 %v1173_v8, %v966_v9  ;;  %v1398_v11 = vpop.f32.mrb[13].mxu0 }
 0x6ca   :  { %v969_v12 = vpop.f32.mrb[14].mxu0 }
 0x6cb   :  { %v973_v13 = vmul.f32 0.01, %v967_v10  ;;  %v970_v14 = vadd.f32 %v1173_v8, %v969_v12  ;;  %v1399_v15 = vpop.f32.mrb[15].mxu0 }
 0x6cd   :  { %v974_v16 = vmul.f32 0.01, %v970_v14  ;;  %v975_v17 = vmax.f32 %v967_v10, %v973_v13 }
 0x6cf   :  { %v976_v18 = vmax.f32 %v970_v14, %v974_v16 }
 0x6d1   :  { %v977_v19 = vpack.c.bf16 %v976_v18, %v975_v17 }
 0x6d3   :  { %1417 = vmatmul.mubr.bf16.vlgmr.msra.gmra.mrb[12].mxu1 %v977_v19 }
 0x7a6   :  { %v1083_v20 = vpop.f32.mrb[12].mxu1 }
 0x7a7   :  { %v1418_v21 = vpop.f32.mrb[13].mxu1  ;;  %v1084_v23 = vadd.f32 %v1182_v0, %v1083_v20 }
 0x7a8   :  { %v1086_v22 = vpop.f32.mrb[14].mxu1 }
 0x7a9   :  { %v1087_v24 = vadd.f32 %v1182_v0, %v1086_v22  ;;  %v1419_v25 = vpop.f32.mrb[15].mxu1 }
 0x7ab   :  { %v1198_v26 = vpack.c.bf16 %v1087_v24, %v1084_v23 }
 0x7ad   :  { %1199 = vst [vmem:[#allocation17] sm:$0xff] %v1198_v26  }
 0x7ae   :  { %1704 = shalt.err (!%p1701_p6)
}
 0x7af   :  { %s2135_s25 = sld [smem:[#allocation26_spill]] }
 0x7b5   :  { %s1705_s3 = scalar_lea.hbm %s2135_s25, 128 }
 0x7b6   :  { %p1706_p7 = scmp.ne.s32.totalorder %s2135_s25, %s1705_s3  ;;  %p1709_p8 = scmp.lt.u32.totalorder %s1705_s3, %s2135_s25 }
 0x7b8   :  { %p1711_p9 = pnand %p1709_p8, %p1706_p7 }
 0x7ba   :  { %1714 = shalt.err (!%p1711_p9)
}
 0x7bb   :  { %1111 = dma.vmem_to_hbm [thread:$0]  %s1106_s26, 128, %s2135_s25, [#allocation4], %s1729_s22, %s1729_s22, %s1730_s23  }
 0x7bc   :  { %1725 = dma.done.wait [#allocation4], 128  }
 0x7bd   :  { %1726 = vsyncadd [#allocation4], 4294967168 }
 0x7be   :  { %1115 = vsyncpa [#allocation3], 1 }
 0x7bf   :  { %1116 = vsyncpa [#allocation6], 1 }
 0x7c0   :  { %1117 = vsyncpa [#allocation9], 1 }
 0x7c1   :  { %1118 = vsyncpa [#allocation12], 1 }
 0x7c2   :  { %1119 = vsyncpa [#allocation15], 1 }
 0x7c3   :  { %1120 = vsyncpa [#allocation4], 1 }

</bundles_post_ra>
